<compile_context>
chip_gen: v6e
topology: v6e:2x2x1
jax: 0.10.0
libtpu: 0.0.40
codegen_flags: <defaults>
</compile_context>

<pallas_src>
import jax
import jax.numpy as jnp
from jax.experimental import pallas as pl
from jax.experimental.pallas import tpu as pltpu

_H1, _H2, _H3 = 64, 32, 16


def _disc_kernel(x_ref, w1_ref, b1_ref, w2_ref, b2_ref, w3_ref, b3_ref,
                 w4_ref, b4_ref, out_ref):
    # In-kernel cast to bf16 (MXU operand) -- hidden under the x DMA.
    x = x_ref[...].astype(jnp.bfloat16)

    h1 = jnp.dot(x, w1_ref[...], preferred_element_type=jnp.float32) + b1_ref[...]
    h1 = jnp.maximum(h1, 0.0)

    h2 = jnp.dot(h1.astype(jnp.bfloat16), w2_ref[...],
                 preferred_element_type=jnp.float32) + b2_ref[...]
    h2 = jnp.maximum(h2, 0.0)

    h3 = jnp.dot(h2.astype(jnp.bfloat16), w3_ref[...],
                 preferred_element_type=jnp.float32) + b3_ref[...]
    h3 = jnp.maximum(h3, 0.0)

    # Final Linear(16, 1): VPU multiply + lane reduce (cheaper and more robust
    # than an N=1 MXU matmul); sigmoid only on the single valid column.
    logits = jnp.sum(h3 * w4_ref[...], axis=-1, keepdims=True) + b4_ref[...]
    out_ref[...] = jax.nn.sigmoid(logits).astype(out_ref.dtype)


def init_params(key, data_dim):
    """PyTorch-style uniform(+-1/sqrt(fan_in)) init for the 4 Linear layers.

    w1..w3 stored (in_features, out_features) bf16 (MXU operands); biases as
    (1, out) f32 rows.  The final layer is stored as a (1, 16) f32 weight row
    plus a (1, 1) f32 bias for the in-kernel VPU reduce.
    """
    def linear(k, fan_in, fan_out):
        kw, kb = jax.random.split(k)
        bound = 1.0 / jnp.sqrt(jnp.float32(fan_in))
        w = jax.random.uniform(kw, (fan_in, fan_out), jnp.float32, -bound, bound)
        b = jax.random.uniform(kb, (1, fan_out), jnp.float32, -bound, bound)
        return w, b

    k1, k2, k3, k4 = jax.random.split(key, 4)
    w1, b1 = linear(k1, data_dim, _H1)
    w2, b2 = linear(k2, _H1, _H2)
    w3, b3 = linear(k3, _H2, _H3)
    w4, b4 = linear(k4, _H3, 1)

    bf16 = jnp.bfloat16
    return (w1.astype(bf16), b1,
            w2.astype(bf16), b2,
            w3.astype(bf16), b3,
            w4.T,            b4)   # (1,16) f32 row, (1,1) f32 bias


def _round_up(n, m):
    return ((n + m - 1) // m) * m


def _choose_tile(rows, data_dim, itemsize):
    """Batch tile: as big as possible (amortize grid overhead), bounded by a
    ~16 MiB double-buffered x budget (v7x VMEM), multiple of 16, <= rows, and
    small enough to keep >= 2 grid steps when the batch allows (megacore)."""
    x_budget = 16 * 1024 * 1024
    tb = min(4096, max(16, x_budget // (2 * data_dim * itemsize)))
    if rows >= 32:                                   # keep both v7x TCs busy
        tb = min(tb, _round_up(pl.cdiv(rows, 2), 16))
    tb = min(tb, max(16, (rows // 16) * 16))         # never exceed the array
    return max(16, (tb // 16) * 16)


@jax.jit
def adv_discriminator(x, params):
    """Forward pass of AdvDiscriminator. Returns (batch, 1) f32 sigmoid scores."""
    batch = x.shape[0]
    x2 = x.reshape(batch, -1)                        # Flatten only; native dtype
    data_dim = x2.shape[1]

    # Pad only tiny batches up to the 16-row minimum tile; larger batches use
    # Pallas partial edge blocks (no extra pass over x).
    rows = batch
    if batch < 16:
        rows = 16
        x2 = jnp.pad(x2, ((0, rows - batch), (0, 0)))

    tb = _choose_tile(rows, data_dim, x2.dtype.itemsize)
    grid = (pl.cdiv(rows, tb),)

    (w1, b1, w2, b2, w3, b3, w4, b4) = params

    def pinned(arr):
        # Full-array block, constant index -> stays VMEM-resident across steps.
        return pl.BlockSpec(arr.shape, lambda i: (0,) * arr.ndim)

    in_specs = [
        pl.BlockSpec((tb, data_dim), lambda i: (i, 0)),   # streamed x tiles
        pinned(w1), pinned(b1),
        pinned(w2), pinned(b2),
        pinned(w3), pinned(b3),
        pinned(w4), pinned(b4),
    ]
    out_spec = pl.BlockSpec((tb, 1), lambda i: (i, 0))    # lean 1-lane output

    flops = 2 * rows * (data_dim * _H1 + _H1 * _H2 + _H2 * _H3 + _H3 * 1)
    bytes_accessed = (
        int(x2.size) * x2.dtype.itemsize
        + sum(int(p.size) * p.dtype.itemsize for p in params)
        + rows * 4
    )
    cost = pl.CostEstimate(flops=flops, transcendentals=rows,
                           bytes_accessed=bytes_accessed)

    out = pl.pallas_call(
        _disc_kernel,
        out_shape=jax.ShapeDtypeStruct((rows, 1), jnp.float32),
        grid=grid,
        in_specs=in_specs,
        out_specs=out_spec,
        compiler_params=pltpu.CompilerParams(
            dimension_semantics=("parallel",),
            vmem_limit_bytes=32 * 1024 * 1024),
        cost_estimate=cost,
    )(x2, w1, b1, w2, b2, w3, b3, w4, b4)

    return out[:batch]


def _reference(x, params):
    """Pure-JAX f32 reference (uses the same bf16-rounded weights)."""
    w1, b1, w2, b2, w3, b3, w4r, b4 = params
    h = x.reshape(x.shape[0], -1).astype(jnp.float32)
    h = jnp.maximum(h @ w1.astype(jnp.float32) + b1, 0.0)
    h = jnp.maximum(h @ w2.astype(jnp.float32) + b2, 0.0)
    h = jnp.maximum(h @ w3.astype(jnp.float32) + b3, 0.0)
    logits = h @ w4r.T + b4
    return jax.nn.sigmoid(logits)


if __name__ == "__main__":
    key = jax.random.PRNGKey(0)
    k_x, k_p = jax.random.split(key)

    # Example: x of shape (batch=2, 4, 16); Flatten -> dataDim = 64.
    batch, c, f = 2, 4, 16
    data_dim = c * f

    x = jax.random.normal(k_x, (batch, c, f), dtype=jnp.float32)
    params = init_params(k_p, data_dim)

    out = adv_discriminator(x, params)
    jax.block_until_ready(out)

    assert out.shape == (batch, 1) and out.dtype == jnp.float32
    assert bool(jnp.all((out >= 0.0) & (out <= 1.0)))
    ref = _reference(x, params)
    assert bool(jnp.allclose(out, ref, atol=2e-2)), (out, ref)
    print("KERNEL_OK")
</pallas_src>

<mosaic_0001>
module attributes {stable_mosaic.version = 11 : i64} {
  func.func @_disc_kernel(%arg0: i32, %arg1: memref<16x64xf32, #tpu.memory_space<vmem>>, %arg2: memref<64x64xbf16, #tpu.memory_space<vmem>>, %arg3: memref<1x64xf32, #tpu.memory_space<vmem>>, %arg4: memref<64x32xbf16, #tpu.memory_space<vmem>>, %arg5: memref<1x32xf32, #tpu.memory_space<vmem>>, %arg6: memref<32x16xbf16, #tpu.memory_space<vmem>>, %arg7: memref<1x16xf32, #tpu.memory_space<vmem>>, %arg8: memref<1x16xf32, #tpu.memory_space<vmem>>, %arg9: memref<1x1xf32, #tpu.memory_space<vmem>>, %arg10: memref<16x1xf32, #tpu.memory_space<vmem>>) attributes {dimension_semantics = [#tpu.dimension_semantics<parallel>], iteration_bounds = array<i64: 1>, scalar_prefetch = 0 : i64, scratch_operands = 0 : i64, tpu.core_type = #tpu.core_type<tc>, window_params = [{transform_indices = @transform_0, window_bounds = array<i64: 16, 64>}, {pipeline_mode = #tpu.pipeline_mode<synchronous>, transform_indices = @transform_1, window_bounds = array<i64: 64, 64>}, {pipeline_mode = #tpu.pipeline_mode<synchronous>, transform_indices = @transform_2, window_bounds = array<i64: 1, 64>}, {pipeline_mode = #tpu.pipeline_mode<synchronous>, transform_indices = @transform_3, window_bounds = array<i64: 64, 32>}, {pipeline_mode = #tpu.pipeline_mode<synchronous>, transform_indices = @transform_4, window_bounds = array<i64: 1, 32>}, {pipeline_mode = #tpu.pipeline_mode<synchronous>, transform_indices = @transform_5, window_bounds = array<i64: 32, 16>}, {pipeline_mode = #tpu.pipeline_mode<synchronous>, transform_indices = @transform_6, window_bounds = array<i64: 1, 16>}, {pipeline_mode = #tpu.pipeline_mode<synchronous>, transform_indices = @transform_7, window_bounds = array<i64: 1, 16>}, {pipeline_mode = #tpu.pipeline_mode<synchronous>, transform_indices = @transform_8, window_bounds = array<i64: 1, 1>}, {transform_indices = @transform_9, window_bounds = array<i64: 16, 1>}]} {
    %c0 = arith.constant 0 : index
    %c0_0 = arith.constant 0 : index
    %0 = vector.load %arg1[%c0, %c0_0] : memref<16x64xf32, #tpu.memory_space<vmem>>, vector<16x64xf32>
    %1 = arith.truncf %0 : vector<16x64xf32> to vector<16x64xbf16>
    %c0_1 = arith.constant 0 : index
    %c0_2 = arith.constant 0 : index
    %2 = vector.load %arg2[%c0_1, %c0_2] : memref<64x64xbf16, #tpu.memory_space<vmem>>, vector<64x64xbf16>
    %cst = arith.constant dense<0.000000e+00> : vector<16x64xf32>
    %3 = tpu.matmul %1, %2, %cst {dimension_numbers = #tpu.dot_dimension_numbers<[1], [0], [0], [1], [0, 0, 1, 1], [], []>} : vector<16x64xbf16>, vector<64x64xbf16>, vector<16x64xf32> -> vector<16x64xf32>
    %c0_3 = arith.constant 0 : index
    %c0_4 = arith.constant 0 : index
    %4 = vector.load %arg3[%c0_3, %c0_4] : memref<1x64xf32, #tpu.memory_space<vmem>>, vector<1x64xf32>
    %5 = vector.broadcast %4 : vector<1x64xf32> to vector<16x64xf32>
    %6 = arith.addf %3, %5 : vector<16x64xf32>
    %cst_5 = arith.constant 0.000000e+00 : f32
    %7 = vector.broadcast %cst_5 : f32 to vector<16x64xf32>
    %8 = arith.maximumf %6, %7 : vector<16x64xf32>
    %9 = arith.truncf %8 : vector<16x64xf32> to vector<16x64xbf16>
    %c0_6 = arith.constant 0 : index
    %c0_7 = arith.constant 0 : index
    %10 = vector.load %arg4[%c0_6, %c0_7] : memref<64x32xbf16, #tpu.memory_space<vmem>>, vector<64x32xbf16>
    %cst_8 = arith.constant dense<0.000000e+00> : vector<16x32xf32>
    %11 = tpu.matmul %9, %10, %cst_8 {dimension_numbers = #tpu.dot_dimension_numbers<[1], [0], [0], [1], [0, 0, 1, 1], [], []>} : vector<16x64xbf16>, vector<64x32xbf16>, vector<16x32xf32> -> vector<16x32xf32>
    %c0_9 = arith.constant 0 : index
    %c0_10 = arith.constant 0 : index
    %12 = vector.load %arg5[%c0_9, %c0_10] : memref<1x32xf32, #tpu.memory_space<vmem>>, vector<1x32xf32>
    %13 = vector.broadcast %12 : vector<1x32xf32> to vector<16x32xf32>
    %14 = arith.addf %11, %13 : vector<16x32xf32>
    %cst_11 = arith.constant 0.000000e+00 : f32
    %15 = vector.broadcast %cst_11 : f32 to vector<16x32xf32>
    %16 = arith.maximumf %14, %15 : vector<16x32xf32>
    %17 = arith.truncf %16 : vector<16x32xf32> to vector<16x32xbf16>
    %c0_12 = arith.constant 0 : index
    %c0_13 = arith.constant 0 : index
    %18 = vector.load %arg6[%c0_12, %c0_13] : memref<32x16xbf16, #tpu.memory_space<vmem>>, vector<32x16xbf16>
    %cst_14 = arith.constant dense<0.000000e+00> : vector<16x16xf32>
    %19 = tpu.matmul %17, %18, %cst_14 {dimension_numbers = #tpu.dot_dimension_numbers<[1], [0], [0], [1], [0, 0, 1, 1], [], []>} : vector<16x32xbf16>, vector<32x16xbf16>, vector<16x16xf32> -> vector<16x16xf32>
    %c0_15 = arith.constant 0 : index
    %c0_16 = arith.constant 0 : index
    %20 = vector.load %arg7[%c0_15, %c0_16] : memref<1x16xf32, #tpu.memory_space<vmem>>, vector<1x16xf32>
    %21 = vector.broadcast %20 : vector<1x16xf32> to vector<16x16xf32>
    %22 = arith.addf %19, %21 : vector<16x16xf32>
    %cst_17 = arith.constant 0.000000e+00 : f32
    %23 = vector.broadcast %cst_17 : f32 to vector<16x16xf32>
    %24 = arith.maximumf %22, %23 : vector<16x16xf32>
    %c0_18 = arith.constant 0 : index
    %c0_19 = arith.constant 0 : index
    %25 = vector.load %arg8[%c0_18, %c0_19] : memref<1x16xf32, #tpu.memory_space<vmem>>, vector<1x16xf32>
    %26 = vector.broadcast %25 : vector<1x16xf32> to vector<16x16xf32>
    %27 = arith.mulf %24, %26 : vector<16x16xf32>
    %cst_20 = arith.constant dense<0.000000e+00> : vector<16xf32>
    %28 = vector.multi_reduction <add>, %27, %cst_20 [1] : vector<16x16xf32> to vector<16xf32>
    %29 = vector.shape_cast %28 : vector<16xf32> to vector<16x1xf32>
    %c0_21 = arith.constant 0 : index
    %c0_22 = arith.constant 0 : index
    %30 = vector.load %arg9[%c0_21, %c0_22] : memref<1x1xf32, #tpu.memory_space<vmem>>, vector<1x1xf32>
    %31 = vector.broadcast %30 : vector<1x1xf32> to vector<16x1xf32>
    %32 = arith.addf %29, %31 : vector<16x1xf32>
    %33 = arith.negf %32 : vector<16x1xf32>
    %34 = math.exp %33 : vector<16x1xf32>
    %cst_23 = arith.constant 1.000000e+00 : f32
    %35 = vector.broadcast %cst_23 : f32 to vector<16x1xf32>
    %36 = arith.addf %35, %34 : vector<16x1xf32>
    %37 = arith.divf %35, %36 : vector<16x1xf32>
    %c0_24 = arith.constant 0 : index
    %c0_25 = arith.constant 0 : index
    %38 = vector.load %arg10[%c0_24, %c0_25] : memref<16x1xf32, #tpu.memory_space<vmem>>, vector<16x1xf32>
    tpu.vector_store %arg10[%c0_24, %c0_25], %37 {strides = array<i32>} : memref<16x1xf32, #tpu.memory_space<vmem>>, vector<16x1xf32>,
    return
  }
  func.func @transform_0(%arg0: i32) -> (i32, i32) {
    %c0_i32 = arith.constant 0 : i32
    %c0_i32_0 = arith.constant 0 : i32
    return %arg0, %c0_i32 : i32, i32
  }
  func.func @transform_1(%arg0: i32) -> (i32, i32) {
    %c0_i32 = arith.constant 0 : i32
    %c0_i32_0 = arith.constant 0 : i32
    %c0_i32_1 = arith.constant 0 : i32
    return %c0_i32, %c0_i32_0 : i32, i32
  }
  func.func @transform_2(%arg0: i32) -> (i32, i32) {
    %c0_i32 = arith.constant 0 : i32
    %c0_i32_0 = arith.constant 0 : i32
    %c0_i32_1 = arith.constant 0 : i32
    return %c0_i32, %c0_i32_0 : i32, i32
  }
  func.func @transform_3(%arg0: i32) -> (i32, i32) {
    %c0_i32 = arith.constant 0 : i32
    %c0_i32_0 = arith.constant 0 : i32
    %c0_i32_1 = arith.constant 0 : i32
    return %c0_i32, %c0_i32_0 : i32, i32
  }
  func.func @transform_4(%arg0: i32) -> (i32, i32) {
    %c0_i32 = arith.constant 0 : i32
    %c0_i32_0 = arith.constant 0 : i32
    %c0_i32_1 = arith.constant 0 : i32
    return %c0_i32, %c0_i32_0 : i32, i32
  }
  func.func @transform_5(%arg0: i32) -> (i32, i32) {
    %c0_i32 = arith.constant 0 : i32
    %c0_i32_0 = arith.constant 0 : i32
    %c0_i32_1 = arith.constant 0 : i32
    return %c0_i32, %c0_i32_0 : i32, i32
  }
  func.func @transform_6(%arg0: i32) -> (i32, i32) {
    %c0_i32 = arith.constant 0 : i32
    %c0_i32_0 = arith.constant 0 : i32
    %c0_i32_1 = arith.constant 0 : i32
    return %c0_i32, %c0_i32_0 : i32, i32
  }
  func.func @transform_7(%arg0: i32) -> (i32, i32) {
    %c0_i32 = arith.constant 0 : i32
    %c0_i32_0 = arith.constant 0 : i32
    %c0_i32_1 = arith.constant 0 : i32
    return %c0_i32, %c0_i32_0 : i32, i32
  }
  func.func @transform_8(%arg0: i32) -> (i32, i32) {
    %c0_i32 = arith.constant 0 : i32
    %c0_i32_0 = arith.constant 0 : i32
    %c0_i32_1 = arith.constant 0 : i32
    return %c0_i32, %c0_i32_0 : i32, i32
  }
  func.func @transform_9(%arg0: i32) -> (i32, i32) {
    %c0_i32 = arith.constant 0 : i32
    %c0_i32_0 = arith.constant 0 : i32
    return %arg0, %c0_i32 : i32, i32
  }
}

</mosaic_0001>

<bundles_post_ra>
// kernel: adv_discriminator.1
= control target key start
LH: loop header
LB: loop body
LE: loop exit
PB: predicated region body
PF: predicated region fallthrough
CT: control target
= control target key end

     0   :  { %v410_v0 = vmov 0.0   ;;  %vm411_vm0 = vmmov 0   ;;  %vm77_vm1 = vcmask 523264   ;;  %vm234_vm2 = vcmask 261120   ;;  %s524_s1 = inlined_call_operand.vmem [shape: bf16[64,64], index: 1, kind: input, shape index: {}]   ;;  %s525_s3 = inlined_call_operand.vmem [shape: bf16[64,32], index: 3, kind: input, shape index: {}]   ;;  %s526_s0 = inlined_call_operand.vmem [shape: f32[16,64], index: 0, kind: input, shape index: {}]   ;;  %s527_s2 = inlined_call_operand.vmem [shape: f32[1,64], index: 2, kind: input, shape index: {}]   ;;  %s528_s5 = inlined_call_operand.vmem [shape: bf16[32,16], index: 5, kind: input, shape index: {}]   ;;  %s529_s4 = inlined_call_operand.vmem [shape: f32[1,32], index: 4, kind: input, shape index: {}]   ;;  %s530_s8 = inlined_call_operand.<no memory space> [shape: f32[1,1], index: 8, kind: input, shape index: {}]   ;;  %s531_s6 = inlined_call_operand.vmem [shape: f32[1,16], index: 6, kind: input, shape index: {}]   ;;  %s532_s7 = inlined_call_operand.vmem [shape: f32[1,16], index: 7, kind: input, shape index: {}]   ;;  %s533_s9 = inlined_call_operand.vmem [shape: f32[16,1], index: 9, kind: output, shape index: {}]  }
   0x1   :  { %358 = vmatprep.subr.bf16.mxu0 %v410_v0  ;;  %v392_v1 = vld [vmem:[%s524_s1 + $0x18] sm:$0xff]   ;;  %366 = vmatprep.mubr.msk.bf16.mxu0 %vm411_vm0, %v410_v0  ;;  %v393_v2 = vld [vmem:[%s524_s1 + $0x10] sm:$0xff]   ;;  %v394_v3 = vld [vmem:[%s524_s1 + $0x8] sm:$0xff]   ;;  %v14_v34 = vstv %s530_s8  ;;  %vm290_vm3 = vcmask 130048   ;;  %vm318_vm4 = vcmask 7168  }
   0x2   :  { %370 = vmatprep.subr.bf16.mxu1 %v410_v0  ;;  %378 = vmatprep.mubr.msk.bf16.mxu1 %vm411_vm0, %v410_v0  ;;  %v396_v4 = vld [vmem:[%s525_s3 + $0x18] sm:$0xff]   ;;  %v395_v5 = vld [vmem:[%s524_s1] sm:$0xff]   ;;  %v36_v7 = vld [vmem:[%s526_s0 + $0x8] sm:$0xff]  ;;  %15 = vst [vmem:[#allocation2] sm:$0x1] %v14_v34 }
   0x3   :  { %359 = vmatpush3.bf16.msra.mxu0 %v392_v1  ;;  %371 = vmatpush3.bf16.msra.mxu1 %v396_v4  ;;  %v35_v6 = vld [vmem:[%s526_s0] sm:$0xff]  ;;  %v397_v9 = vld [vmem:[%s525_s3 + $0x10] sm:$0xff]   ;;  %v398_v10 = vld [vmem:[%s525_s3 + $0x8] sm:$0xff]  }
   0x4   :  { %360 = vmatprep.subr.bf16.mxu0 %v410_v0  ;;  %372 = vmatprep.subr.bf16.mxu1 %v410_v0  ;;  %v37_v8 = vpack.c.bf16 %v36_v7, %v35_v6  ;;  %v399_v11 = vld [vmem:[%s525_s3] sm:$0xff]   ;;  %v400_v22 = vld [vmem:[%s528_s5 + $0x8] sm:$0xff]  }
   0x5   :  { %v325_v12 = vld [vmem:[%s527_s2] ss:$0 sm:$0xff] }
   0x6   :  { %v401_v23 = vld [vmem:[%s528_s5] sm:$0xff]  }
   0x7   :  { %361 = vmatpush3.bf16.msra.mxu0 %v393_v2  ;;  %373 = vmatpush3.bf16.msra.mxu1 %v397_v9  ;;  %v331_v24 = vld [vmem:[%s529_s4] ss:$0 sm:$0xff] }
   0x8   :  { %362 = vmatprep.subr.bf16.mxu0 %v410_v0  ;;  %374 = vmatprep.subr.bf16.mxu1 %v410_v0  ;;  %v337_v35 = vld [vmem:[%s531_s6] ss:$0 sm:$0xff] }
   0x9   :  { %v341_v39 = vld [vmem:[%s532_s7] ss:$0 sm:$0xff] }
   0xa   :  { %v342_v49 = vld [vmem:[#allocation2] ss:$0 sm:$0xff] }
   0xb   :  { %363 = vmatpush3.bf16.msra.mxu0 %v394_v3  ;;  %375 = vmatpush3.bf16.msra.mxu1 %v398_v10 }
   0xc   :  { %364 = vmatprep.subr.bf16.mxu0 %v410_v0  ;;  %376 = vmatprep.subr.bf16.mxu1 %v410_v0 }
   0xf   :  { %365 = vmatpush3.bf16.msra.mxu0 %v395_v5  ;;  %377 = vmatpush3.bf16.msra.mxu1 %v399_v11 }
  0x10   :  { %382 = vmatprep.subr.bf16.mxu0 %v410_v0 }
  0x12   :  { %367 = vmatmul.mubr.msk.bf16.vlgmr.msra.gmra.mxu0 %vm77_vm1, %v37_v8 }
  0x13   :  { %386 = vmatprep.mubr.msk.bf16.mxu0 %vm411_vm0, %v410_v0  ;;  %383 = vmatpush3.bf16.msra.mxu0 %v400_v22 }
  0x14   :  { %384 = vmatprep.subr.bf16.mxu0 %v410_v0 }
  0x17   :  { %385 = vmatpush3.bf16.msra.mxu0 %v401_v23 }
  0xd2   :  { %v115_v13 = vpop.f32.mrf.mxu0 }
  0xd3   :  { %v116_v15 = vadd.f32 %v325_v12, %v115_v13 }
  0xd4   :  { %v368_v14 = vpop.f32.mrf.mxu0 }
  0xd5   :  { %v122_v19 = vmax.f32 %v116_v15, 0.0 }
  0xd6   :  { %v118_v16 = vpop.f32.mrf.mxu0 }
  0xd7   :  { %v119_v17 = vadd.f32 %v325_v12, %v118_v16 }
  0xd8   :  { %v369_v18 = vpop.f32.mrf.mxu0 }
  0xd9   :  { %v123_v20 = vmax.f32 %v119_v17, 0.0 }
  0xdb   :  { %v124_v21 = vpack.c.bf16 %v123_v20, %v122_v19 }
  0xdd   :  { %379 = vmatmul.mubr.msk.bf16.vlgmr.msra.gmra.mxu1 %vm77_vm1, %v124_v21 }
 0x19d   :  { %v201_v25 = vpop.f32.mrf.mxu1 }
 0x19e   :  { %v202_v27 = vadd.f32 %v331_v24, %v201_v25 }
 0x19f   :  { %v380_v26 = vpop.f32.mrf.mxu1 }
 0x1a0   :  { %v208_v31 = vmax.f32 %v202_v27, 0.0 }
 0x1a1   :  { %v204_v28 = vpop.f32.mrf.mxu1 }
 0x1a2   :  { %v205_v29 = vadd.f32 %v331_v24, %v204_v28 }
 0x1a3   :  { %v381_v30 = vpop.f32.mrf.mxu1 }
 0x1a4   :  { %v209_v32 = vmax.f32 %v205_v29, 0.0 }
 0x1a6   :  { %v210_v33 = vpack.c.bf16 %v209_v32, %v208_v31 }
 0x1a8   :  { %387 = vmatmul.mubr.msk.bf16.vlgmr.msra.gmra.mxu0 %vm234_vm2, %v210_v33 }
 0x268   :  { %v272_v36 = vpop.f32.mrf.mxu0 }
 0x269   :  { %v273_v37 = vadd.f32 %v337_v35, %v272_v36 }
 0x26a   :  { %v388_v38 = vpop.f32.mrf.mxu0 }
 0x26b   :  { %v279_v40 = vmax.f32 %v273_v37, 0.0 }
 0x26c   :  { %v275_v41 = vpop.f32.mrf.mxu0 }
 0x26d   :  { %v276_v42 = vadd.f32 %v337_v35, %v275_v41  ;;  %v288_v43 = vmul.f32 %v341_v39, %v279_v40 }
 0x26e   :  { %v389_v44 = vpop.f32.mrf.mxu0 }
 0x26f   :  { %v280_v45 = vmax.f32 %v276_v42, 0.0  ;;  %v291_v46 = vsel %vm290_vm3, %v288_v43, 0.0 }
 0x270   :  { %292 = vadd.xlane.f32.xlu0 %v291_v46 }
 0x271   :  { %v289_v47 = vmul.f32 %v341_v39, %v280_v45 }
 0x273   :  { %v294_v48 = vsel %vm290_vm3, %v289_v47, 0.0 }
 0x274   :  { %295 = vadd.xlane.f32.xlu0 %v294_v48 }
 0x2f9   :  { %v293_v50 = vpop.xlane.xlu0 %292 }
 0x2fa   :  { %v304_v51 = vadd.f32 %v342_v49, %v293_v50 }
 0x2fc   :  { %v343_v52 = vmul.f32 -1.442695, %v304_v51 }
 0x2fd   :  { %v296_v53 = vpop.xlane.xlu0 %295 }
 0x2fe   :  { %402 = vpow2.f32 %v343_v52  ;;  %v305_v54 = vadd.f32 %v342_v49, %v296_v53 }
 0x300   :  { %v344_v55 = vmul.f32 -1.442695, %v305_v54 }
 0x302   :  { %404 = vpow2.f32 %v344_v55 }
 0x30b   :  { %v403_v56 = vpop.eup %402 }
 0x30c   :  { %v312_v57 = vadd.f32 1.0, %v403_v56 }
 0x30e   :  { %406 = vrcp.f32 %v312_v57 }
 0x30f   :  { %v405_v58 = vpop.eup %404 }
 0x310   :  { %v313_v59 = vadd.f32 1.0, %v405_v58 }
 0x312   :  { %408 = vrcp.f32 %v313_v59 }
 0x31b   :  { %v407_v60 = vpop.eup %406 }
 0x31c   :  { %319 = vst.msk [vmem:[%s533_s9] sm:$0xff] %vm318_vm4, %v407_v60 }
 0x31f   :  { %v409_v61 = vpop.eup %408 }
 0x320   :  { %320 = vst.msk [vmem:[%s533_s9 + $0x8] sm:$0xff] %vm318_vm4, %v409_v61 }

</bundles_post_ra>
